<compile_context>
chip_gen: v6e
topology: v6e:2x2x1
jax: 0.10.0
libtpu: 0.0.40
codegen_flags: <defaults>
</compile_context>

<pallas_src>
import math

import jax
import jax.numpy as jnp
from jax.experimental import pallas as pl
from jax.experimental.pallas import tpu as pltpu


_GEM_EPS = 1e-6
_NORM_EPS_SQ = 1e-24   # (PyTorch F.normalize eps 1e-12)**2, applied to the sum of squares


# ---------------------------------------------------------------------------
# Kernel
# ---------------------------------------------------------------------------

def _int_pow(x, n):
    """x**n for integer n >= 1 via repeated multiplies (VPU only, no EUP)."""
    result = None
    base = x
    while n:
        if n & 1:
            result = base if result is None else result * base
        n >>= 1
        if n:
            base = base * base
    return result


def _pow_fixed(x, p):
    """x**p for trace-time-known p with 2*p integral (integer or half-integer)."""
    k = int(math.floor(p))
    has_half = (p - k) == 0.5
    out = _int_pow(x, k) if k >= 1 else None
    if has_half:
        s = jnp.sqrt(x)               # single EUP op instead of exp+log
        out = s if out is None else out * s
    return out


def _make_cosplace_kernel(p_val, hw_total):
    """p_val: Python float with 2*p integral (specialized), or None (generic exp/log)."""
    log_hw = math.log(float(hw_total))

    def kernel(p_ref, x_ref, w_ref, b_ref, o_ref, acc_ref):
        s = pl.program_id(1)

        @pl.when(s == 0)
        def _():
            acc_ref[...] = jnp.zeros_like(acc_ref)

        # Stream native dtype (bf16/f32) from HBM; upcast per tile for the math.
        x = x_ref[...].astype(jnp.float32)               # (tb, C, thw), NCHW layout
        # F.normalize(p=2, dim=1): rsqrt-then-multiply instead of sqrt-then-divide.
        ssq = jnp.sum(x * x, axis=1, keepdims=True)      # (tb, 1, thw)
        x = x * jax.lax.rsqrt(jnp.maximum(ssq, _NORM_EPS_SQ))

        # GeM: clamp(min=eps) ** p; accumulate the spatial *sum* across thw tiles.
        x = jnp.maximum(x, _GEM_EPS)
        if p_val is not None:
            xp = _pow_fixed(x, p_val)                    # VPU mults (+ optional sqrt)
        else:
            xp = jnp.exp(p_ref[0] * jnp.log(x))          # generic pow on the EUP (slow path)
        acc_ref[...] += jnp.sum(xp, axis=2)              # (tb, C) partial spatial sum

        @pl.when(s == pl.num_programs(1) - 1)
        def _():
            if p_val is not None:
                inv_p = jnp.float32(1.0 / p_val)
            else:
                inv_p = 1.0 / p_ref[0]
            # (sum / HW) ** (1/p) == exp((log(sum) - log(HW)) / p); sum > 0 by the clamp.
            pooled = jnp.exp((jnp.log(acc_ref[...]) - log_hw) * inv_p)   # (tb, C)
            y = jnp.dot(pooled, w_ref[...], preferred_element_type=jnp.float32)
            y = y + b_ref[...]
            ssq_y = jnp.sum(y * y, axis=-1, keepdims=True)
            o_ref[...] = y * jax.lax.rsqrt(jnp.maximum(ssq_y, _NORM_EPS_SQ))

    return kernel


# ---------------------------------------------------------------------------
# Tiling / VMEM budgeting
# ---------------------------------------------------------------------------

def _vmem_capacity_bytes():
    try:
        cap = getattr(pltpu.get_tpu_info(), "vmem_capacity_bytes", None)
        if cap:
            return int(cap)
    except Exception:
        pass
    return 64 << 20   # conservative default (v7x per-core VMEM)


def _choose_tiles(B, C, HW, x_itemsize, out_pad, tb, thw, tile_budget_bytes):
    """Pick (tb, thw) so the working set fits the generation-specific VMEM budget."""

    def tb_candidates():
        cands = []
        for d in (128, 64, 32, 16, 8):           # prefer bigger batch blocks (MXU rows),
            if B % d == 0 and B // d >= 2:       # but keep >= 2 grid rows for megacore.
                cands.append(d)
        if B % 8 == 0 and 8 not in cands:
            cands.append(8)
        if B not in cands:
            cands.append(B)                      # small-B fallback (full batch block)
        return cands

    def thw_candidates():
        cands = sorted({d for d in range(128, HW + 1, 128) if HW % d == 0}, reverse=True)
        if HW not in cands:
            cands.insert(0, HW)
        return cands                             # largest first (longer DMA rows)

    def fits(tb_, thw_):
        x_tile = tb_ * C * thw_
        need = (2 * x_tile * x_itemsize          # double-buffered streamed input tile
                + 3 * x_tile * 4                 # in-kernel f32 intermediates (peak)
                + 2 * C * out_pad * 4            # fc weight (double-buffered by Pallas)
                + 2 * 2 * out_pad * 4            # fc bias
                + 2 * tb_ * out_pad * 4          # output blocks
                + tb_ * C * 4)                   # GeM accumulator scratch
        return need <= tile_budget_bytes

    tbs = [tb] if tb is not None else tb_candidates()
    thws = [thw] if thw is not None else thw_candidates()

    # Pass 1 prefers thw >= 512 (or full HW); later passes relax that requirement.
    for min_thw in (min(512, HW), 128, 0):
        for tb_ in tbs:
            for thw_ in thws:
                if thw_ < min_thw:
                    continue
                if fits(tb_, thw_):
                    assert B % tb_ == 0 and HW % thw_ == 0
                    return tb_, thw_
    # Nothing fits the budget: take the smallest footprint and let the compiler cope.
    tb_ = tbs[-1]
    thw_ = thws[-1]
    assert B % tb_ == 0 and HW % thw_ == 0, (B, tb_, HW, thw_)
    return tb_, thw_


# ---------------------------------------------------------------------------
# Wrapper
# ---------------------------------------------------------------------------

def prepare_cosplace_fc(fc_weight, fc_bias):
    """Transpose + lane-pad the fc params once per parameter set (reuse across calls)."""
    OUT, C = fc_weight.shape
    out_pad = ((OUT + 127) // 128) * 128
    w_t = jnp.zeros((C, out_pad), jnp.float32).at[:, :OUT].set(
        jnp.transpose(fc_weight, (1, 0)).astype(jnp.float32))
    b_2d = jnp.zeros((1, out_pad), jnp.float32).at[:, :OUT].set(
        fc_bias.astype(jnp.float32).reshape(1, OUT))
    return w_t, b_2d, OUT


def cosplace_forward(x_nchw, p, fc_weight=None, fc_bias=None, *,
                     prepared_fc=None, tb=None, thw=None):
    """CosPlace forward.

    x_nchw: (B, C, H, W), f32 or bf16 (bf16 streams half the HBM bytes).
    fc params: either raw (fc_weight (OUT, C), fc_bias (OUT,)) or a precomputed
    `prepared_fc = prepare_cosplace_fc(...)` tuple (preferred for repeated calls).
    """
    if prepared_fc is None:
        prepared_fc = prepare_cosplace_fc(fc_weight, fc_bias)
    w_t, b_2d, OUT = prepared_fc

    B, C, H, W = x_nchw.shape
    HW = H * W
    out_pad = w_t.shape[1]
    assert w_t.shape[0] == C

    # Stream the backbone's native dtype; anything exotic falls back to f32.
    if x_nchw.dtype not in (jnp.float32, jnp.bfloat16):
        x_nchw = x_nchw.astype(jnp.float32)
    x_itemsize = x_nchw.dtype.itemsize
    x_b = jnp.reshape(x_nchw, (B, C, HW))            # free reshape, no HBM transpose pass

    p_arr = jnp.asarray(p, jnp.float32).reshape(1)

    # Trace-time specialization: integer / half-integer p skips the EUP exp/log pow.
    p_val = None
    try:
        pv = float(jax.device_get(jnp.asarray(p)))
        if 0.5 <= pv <= 8.0 and (pv * 2.0) == round(pv * 2.0):
            p_val = pv
    except Exception:
        p_val = None   # traced / non-concrete p -> generic exp/log path

    # Generation-aware VMEM budgeting (64 MiB on v7x, 128 MiB on v5e/v6e).
    vmem_cap = _vmem_capacity_bytes()
    vmem_limit = min(vmem_cap * 3 // 4, 112 << 20)
    tile_budget = vmem_limit * 4 // 5
    tb, thw = _choose_tiles(B, C, HW, x_itemsize, out_pad, tb, thw, tile_budget)
    grid = (B // tb, HW // thw)

    n_trans = B * HW + 2 * B * C + B                 # rsqrts + pooled log/exp
    if p_val is None:
        n_trans += 2 * B * C * HW                    # per-element exp + log
    elif p_val != int(p_val):
        n_trans += B * C * HW                        # per-element sqrt

    out = pl.pallas_call(
        _make_cosplace_kernel(p_val, HW),
        out_shape=jax.ShapeDtypeStruct((B, out_pad), jnp.float32),
        grid=grid,
        in_specs=[
            pl.BlockSpec(memory_space=pltpu.MemorySpace.SMEM),      # p (1,) scalar
            pl.BlockSpec((tb, C, thw), lambda b, s: (b, 0, s)),     # x tiles (native dtype)
            pl.BlockSpec((C, out_pad), lambda b, s: (0, 0)),        # fc weight (fetched once)
            pl.BlockSpec((1, out_pad), lambda b, s: (0, 0)),        # fc bias  (fetched once)
        ],
        out_specs=pl.BlockSpec((tb, out_pad), lambda b, s: (b, 0)),
        scratch_shapes=[pltpu.VMEM((tb, C), jnp.float32)],          # GeM partial sums
        compiler_params=pltpu.CompilerParams(
            dimension_semantics=("parallel", "arbitrary"),
            vmem_limit_bytes=int(vmem_limit),
        ),
        cost_estimate=pl.CostEstimate(
            flops=7 * B * C * HW + 2 * B * C * out_pad,
            transcendentals=int(n_trans),
            bytes_accessed=int(x_itemsize * B * C * HW
                               + 4 * (C * out_pad + out_pad + B * out_pad)),
        ),
    )(p_arr, x_b, w_t, b_2d)

    return out[:, :OUT]


def cosplace_reference(x_nchw, p, fc_weight, fc_bias):
    """Pure-JAX reference mirroring the PyTorch module."""
    eps_norm = 1e-12
    x = x_nchw.astype(jnp.float32)
    n = jnp.sqrt(jnp.sum(x * x, axis=1, keepdims=True))
    x = x / jnp.maximum(n, eps_norm)
    x = jnp.maximum(x, 1e-6) ** p                        # GeM clamp + pow
    x = jnp.mean(x, axis=(2, 3)) ** (1.0 / p)            # (B, C)
    y = x @ fc_weight.T + fc_bias
    n2 = jnp.sqrt(jnp.sum(y * y, axis=1, keepdims=True))
    return y / jnp.maximum(n2, eps_norm)


if __name__ == "__main__":
    B, C, H, W = 2, 4, 16, 16
    OUT = 8

    key = jax.random.PRNGKey(0)
    kx, kw, kb = jax.random.split(key, 3)

    x = jax.random.normal(kx, (B, C, H, W), dtype=jnp.float32)

    # Deterministic parameter init (nn.Linear-style uniform bounds).
    bound = 1.0 / (C ** 0.5)
    fc_weight = jax.random.uniform(kw, (OUT, C), jnp.float32, -bound, bound)
    fc_bias = jax.random.uniform(kb, (OUT,), jnp.float32, -bound, bound)
    prepared = prepare_cosplace_fc(fc_weight, fc_bias)   # hoisted out of the per-call path

    # Default GeM p = 3 -> integer VPU fast path.
    p = jnp.float32(3.0)
    ref = cosplace_reference(x, p, fc_weight, fc_bias)

    # 1) Default generation-aware tiling (single full-HW spatial tile at this size).
    out = jax.block_until_ready(cosplace_forward(x, p, prepared_fc=prepared))
    assert out.shape == (B, OUT)
    assert jnp.allclose(out, ref, atol=1e-4, rtol=1e-4), (out, ref)

    # 2) Forced thw=128 -> two spatial grid steps -> exercises the accumulator path.
    out2 = jax.block_until_ready(cosplace_forward(x, p, fc_weight, fc_bias, thw=128))
    assert jnp.allclose(out2, ref, atol=1e-4, rtol=1e-4), (out2, ref)

    # 3) bf16 activation streaming (half the HBM bytes); reference fed the same values.
    x_bf16 = x.astype(jnp.bfloat16)
    out_bf = jax.block_until_ready(cosplace_forward(x_bf16, p, prepared_fc=prepared, thw=128))
    ref_bf = cosplace_reference(x_bf16.astype(jnp.float32), p, fc_weight, fc_bias)
    assert jnp.allclose(out_bf, ref_bf, atol=3e-3, rtol=3e-3), (out_bf, ref_bf)

    # 4) Half-integer p -> sqrt fast path (1 EUP op/element instead of exp+log).
    p25 = jnp.float32(2.5)
    out25 = jax.block_until_ready(cosplace_forward(x, p25, prepared_fc=prepared, thw=128))
    ref25 = cosplace_reference(x, p25, fc_weight, fc_bias)
    assert jnp.allclose(out25, ref25, atol=1e-4, rtol=1e-4), (out25, ref25)

    # 5) Generic non-integer p -> exp(p*log(x)) slow path still works.
    p27 = jnp.float32(2.7)
    out27 = jax.block_until_ready(cosplace_forward(x, p27, prepared_fc=prepared, thw=128))
    ref27 = cosplace_reference(x, p27, fc_weight, fc_bias)
    assert jnp.allclose(out27, ref27, atol=1e-4, rtol=1e-4), (out27, ref27)

    print("KERNEL_OK")
</pallas_src>

<mosaic_0001>
module attributes {stable_mosaic.version = 11 : i64} {
  func.func @kernel(%arg0: i32, %arg1: i32, %arg2: memref<1xf32, #tpu.memory_space<smem>>, %arg3: memref<2x4x256xf32, #tpu.memory_space<vmem>>, %arg4: memref<4x128xf32, #tpu.memory_space<vmem>>, %arg5: memref<1x128xf32, #tpu.memory_space<vmem>>, %arg6: memref<2x128xf32, #tpu.memory_space<vmem>>, %arg7: memref<2x4xf32, #tpu.memory_space<vmem>>) attributes {dimension_semantics = [#tpu.dimension_semantics<parallel>, #tpu.dimension_semantics<arbitrary>], iteration_bounds = array<i64: 1, 1>, scalar_prefetch = 0 : i64, scratch_operands = 1 : i64, tpu.core_type = #tpu.core_type<tc>, window_params = [{transform_indices = @transform_0, window_bounds = array<i64: 1>}, {transform_indices = @transform_1, window_bounds = array<i64: 2, 4, 256>}, {pipeline_mode = #tpu.pipeline_mode<synchronous>, transform_indices = @transform_2, window_bounds = array<i64: 4, 128>}, {pipeline_mode = #tpu.pipeline_mode<synchronous>, transform_indices = @transform_3, window_bounds = array<i64: 1, 128>}, {transform_indices = @transform_4, window_bounds = array<i64: 2, 128>}]} {
    %c0_i32 = arith.constant 0 : i32
    %0 = arith.cmpi eq, %arg1, %c0_i32 : i32
    %1 = arith.extui %0 : i1 to i32
    %c0_i32_0 = arith.constant 0 : i32
    %2 = arith.cmpi ne, %1, %c0_i32_0 : i32
    scf.if %2 {
      %cst_12 = arith.constant 0.000000e+00 : f32
      %23 = vector.broadcast %cst_12 : f32 to vector<2x4xf32>
      %c0_13 = arith.constant 0 : index
      %c0_14 = arith.constant 0 : index
      %24 = vector.load %arg7[%c0_13, %c0_14] : memref<2x4xf32, #tpu.memory_space<vmem>>, vector<2x4xf32>
      tpu.vector_store %arg7[%c0_13, %c0_14], %23 {strides = array<i32>} : memref<2x4xf32, #tpu.memory_space<vmem>>, vector<2x4xf32>,
    } else {
    }
    %c0 = arith.constant 0 : index
    %c0_1 = arith.constant 0 : index
    %c0_2 = arith.constant 0 : index
    %3 = vector.load %arg3[%c0, %c0_1, %c0_2] : memref<2x4x256xf32, #tpu.memory_space<vmem>>, vector<2x4x256xf32>
    %4 = arith.mulf %3, %3 : vector<2x4x256xf32>
    %cst = arith.constant dense<0.000000e+00> : vector<2x256xf32>
    %5 = vector.multi_reduction <add>, %4, %cst [1] : vector<2x4x256xf32> to vector<2x256xf32>
    %6 = vector.shape_cast %5 : vector<2x256xf32> to vector<2x1x256xf32>
    %cst_3 = arith.constant 1.000000e-24 : f32
    %7 = vector.broadcast %cst_3 : f32 to vector<2x1x256xf32>
    %8 = arith.maximumf %6, %7 : vector<2x1x256xf32>
    %9 = math.rsqrt %8 : vector<2x1x256xf32>
    %10 = vector.broadcast %9 : vector<2x1x256xf32> to vector<2x4x256xf32>
    %11 = arith.mulf %3, %10 : vector<2x4x256xf32>
    %cst_4 = arith.constant 9.99999997E-7 : f32
    %12 = vector.broadcast %cst_4 : f32 to vector<2x4x256xf32>
    %13 = arith.maximumf %11, %12 : vector<2x4x256xf32>
    %14 = arith.mulf %13, %13 : vector<2x4x256xf32>
    %15 = arith.mulf %13, %14 : vector<2x4x256xf32>
    %c0_5 = arith.constant 0 : index
    %c0_6 = arith.constant 0 : index
    %16 = vector.load %arg7[%c0_5, %c0_6] : memref<2x4xf32, #tpu.memory_space<vmem>>, vector<2x4xf32>
    %cst_7 = arith.constant dense<0.000000e+00> : vector<2x4xf32>
    %17 = vector.multi_reduction <add>, %15, %cst_7 [2] : vector<2x4x256xf32> to vector<2x4xf32>
    %18 = arith.addf %16, %17 : vector<2x4xf32>
    %c0_8 = arith.constant 0 : index
    %c0_9 = arith.constant 0 : index
    %19 = vector.load %arg7[%c0_8, %c0_9] : memref<2x4xf32, #tpu.memory_space<vmem>>, vector<2x4xf32>
    tpu.vector_store %arg7[%c0_8, %c0_9], %18 {strides = array<i32>} : memref<2x4xf32, #tpu.memory_space<vmem>>, vector<2x4xf32>,
    %c0_i32_10 = arith.constant 0 : i32
    %20 = arith.cmpi eq, %arg1, %c0_i32_10 : i32
    %21 = arith.extui %20 : i1 to i32
    %c0_i32_11 = arith.constant 0 : i32
    %22 = arith.cmpi ne, %21, %c0_i32_11 : i32
    scf.if %22 {
      %c0_12 = arith.constant 0 : index
      %c0_13 = arith.constant 0 : index
      %23 = vector.load %arg7[%c0_12, %c0_13] : memref<2x4xf32, #tpu.memory_space<vmem>>, vector<2x4xf32>
      %24 = math.log %23 : vector<2x4xf32>
      %cst_14 = arith.constant 5.54517746 : f32
      %25 = vector.broadcast %cst_14 : f32 to vector<2x4xf32>
      %26 = arith.subf %24, %25 : vector<2x4xf32>
      %cst_15 = arith.constant 0.333333343 : f32
      %27 = vector.broadcast %cst_15 : f32 to vector<2x4xf32>
      %28 = arith.mulf %26, %27 : vector<2x4xf32>
      %29 = math.exp %28 : vector<2x4xf32>
      %c0_16 = arith.constant 0 : index
      %c0_17 = arith.constant 0 : index
      %30 = vector.load %arg4[%c0_16, %c0_17] : memref<4x128xf32, #tpu.memory_space<vmem>>, vector<4x128xf32>
      %cst_18 = arith.constant dense<0.000000e+00> : vector<2x128xf32>
      %31 = tpu.matmul %29, %30, %cst_18 {dimension_numbers = #tpu.dot_dimension_numbers<[1], [0], [0], [1], [0, 0, 1, 1], [], []>} : vector<2x4xf32>, vector<4x128xf32>, vector<2x128xf32> -> vector<2x128xf32>
      %c0_19 = arith.constant 0 : index
      %c0_20 = arith.constant 0 : index
      %32 = vector.load %arg5[%c0_19, %c0_20] : memref<1x128xf32, #tpu.memory_space<vmem>>, vector<1x128xf32>
      %33 = vector.broadcast %32 : vector<1x128xf32> to vector<2x128xf32>
      %34 = arith.addf %31, %33 : vector<2x128xf32>
      %35 = arith.mulf %34, %34 : vector<2x128xf32>
      %cst_21 = arith.constant dense<0.000000e+00> : vector<2xf32>
      %36 = vector.multi_reduction <add>, %35, %cst_21 [1] : vector<2x128xf32> to vector<2xf32>
      %37 = vector.shape_cast %36 : vector<2xf32> to vector<2x1xf32>
      %cst_22 = arith.constant 1.000000e-24 : f32
      %38 = vector.broadcast %cst_22 : f32 to vector<2x1xf32>
      %39 = arith.maximumf %37, %38 : vector<2x1xf32>
      %40 = math.rsqrt %39 : vector<2x1xf32>
      %41 = vector.broadcast %40 : vector<2x1xf32> to vector<2x128xf32>
      %42 = arith.mulf %34, %41 : vector<2x128xf32>
      %c0_23 = arith.constant 0 : index
      %c0_24 = arith.constant 0 : index
      %43 = vector.load %arg6[%c0_23, %c0_24] : memref<2x128xf32, #tpu.memory_space<vmem>>, vector<2x128xf32>
      tpu.vector_store %arg6[%c0_23, %c0_24], %42 {strides = array<i32>} : memref<2x128xf32, #tpu.memory_space<vmem>>, vector<2x128xf32>,
    } else {
    }
    return
  }
  func.func @transform_0(%arg0: i32, %arg1: i32) -> i32 {
    %c0_i32 = arith.constant 0 : i32
    %c0_i32_0 = arith.constant 0 : i32
    return %c0_i32 : i32
  }
  func.func @transform_1(%arg0: i32, %arg1: i32) -> (i32, i32, i32) {
    %c0_i32 = arith.constant 0 : i32
    %c0_i32_0 = arith.constant 0 : i32
    return %arg0, %c0_i32, %arg1 : i32, i32, i32
  }
  func.func @transform_2(%arg0: i32, %arg1: i32) -> (i32, i32) {
    %c0_i32 = arith.constant 0 : i32
    %c0_i32_0 = arith.constant 0 : i32
    %c0_i32_1 = arith.constant 0 : i32
    return %c0_i32, %c0_i32_0 : i32, i32
  }
  func.func @transform_3(%arg0: i32, %arg1: i32) -> (i32, i32) {
    %c0_i32 = arith.constant 0 : i32
    %c0_i32_0 = arith.constant 0 : i32
    %c0_i32_1 = arith.constant 0 : i32
    return %c0_i32, %c0_i32_0 : i32, i32
  }
  func.func @transform_4(%arg0: i32, %arg1: i32) -> (i32, i32) {
    %c0_i32 = arith.constant 0 : i32
    %c0_i32_0 = arith.constant 0 : i32
    return %arg0, %c0_i32 : i32, i32
  }
}

</mosaic_0001>

<bundles_post_ra>
// kernel: tpu_custom_call.1
= control target key start
LH: loop header
LB: loop body
LE: loop exit
PB: predicated region body
PF: predicated region fallthrough
CT: control target
= control target key end

     0   :  { %10 = vsyncpa [#allocation5], 0  ;;  %s422_s0 = inlined_call_operand.<no memory space> [shape: f32[1], index: 0, kind: input, shape index: {}]   ;;  %s423_s1 = inlined_call_operand.hbm [shape: f32[2,4,256], index: 1, kind: input, shape index: {}]   ;;  %s424_s2 = inlined_call_operand.hbm [shape: f32[4,128], index: 2, kind: input, shape index: {}]   ;;  %s425_s3 = inlined_call_operand.vmem [shape: f32[1,128], index: 3, kind: input, shape index: {}]   ;;  %s426_s4 = inlined_call_operand.hbm [shape: f32[2,128], index: 4, kind: output, shape index: {}]  }
   0x1   :  { %11 = vsyncpa [#allocation8], 0 }
   0x2   :  { %12 = vsyncpa [#allocation6], 0  ;;  %s367_s15 = smov [#allocation4]  }
   0x3   :  { %s20_s16 = sshll.u32 %s367_s15, 4  ;;  %s21_s16 = int_to_ptr.vmem [resolvable:$true] %s20_s16 }
   0x4   :  { %s309_s17 = scalar_lea.vmem %s21_s16, 256  ;;  %p314_p1 = scmp.lt.s32.totalorder %s21_s16, %s21_s16 }
   0x5   :  { %p310_p0 = scmp.ne.s32.totalorder %s21_s16, %s309_s17  ;;  %p315_p2 = scmp.lt.s32.totalorder %s309_s17, %s309_s17 }
   0x7   :  { %p316_p3 = por %p315_p2, %p314_p1 }
   0x9   :  { %p317_p4 = pnand %p316_p3, %p310_p0 }
   0xb   :  { %320 = shalt.err (!%p317_p4)
}
   0xc   :  { %s368_s0 = smov 128   ;;  %s369_s18 = smov 8  }
   0xd   :  { %26 = dma.hbm_to_vmem [thread:$0]  %s423_s1, 256, %s21_s16, [#allocation5], %s368_s0, %s368_s0, %s369_s18  }
   0xe   :  { %s370_s21 = smov [#allocation7]  }
   0xf   :  { %s33_s22 = sshll.u32 %s370_s21, 4  ;;  %s34_s22 = int_to_ptr.vmem [resolvable:$true] %s33_s22 }
  0x10   :  { %s329_s23 = scalar_lea.vmem %s34_s22, 64  ;;  %p334_p6 = scmp.lt.s32.totalorder %s34_s22, %s34_s22 }
  0x11   :  { %p330_p5 = scmp.ne.s32.totalorder %s34_s22, %s329_s23  ;;  %p335_p7 = scmp.lt.s32.totalorder %s329_s23, %s329_s23 }
  0x13   :  { %p336_p8 = por %p335_p7, %p334_p6 }
  0x15   :  { %p337_p9 = pnand %p336_p8, %p330_p5 }
  0x17   :  { %340 = shalt.err (!%p337_p9)
}
  0x18   :  { %36 = dma.hbm_to_vmem [thread:$0]  %s424_s2, 64, %s34_s22, [#allocation8]  }
  0x19   :  { %361 = dma.done.wait [#allocation5], 256  }
  0x1a   :  { %362 = vsyncadd [#allocation5], 4294967040 }
  0x1b   :  { %363 = dma.done.wait [#allocation8], 64  }
  0x1c   :  { %364 = vsyncadd [#allocation8], 4294967232  ;;  %v51_v0 = vld [vmem:[#allocation4] sm:$0xff]  ;;  %vm61_vm0 = vcmask 1043456   ;;  %v52_v1 = vld [vmem:[#allocation4 + $0x8] sm:$0xff]  ;;  %vm49_vm1 = vcmask 25600   ;;  %v133_v62 = vlaneseq }
  0x1d   :  { %v53_v2 = vmul.f32 %v51_v0, %v51_v0  ;;  %v54_v3 = vmul.f32 %v52_v1, %v52_v1  ;;  %v371_v60 = vmov 0.0   ;;  %v159_v61 = vld [vmem:[#allocation7] sm:$0xf]  ;;  %vm372_vm2 = vmmov 0   ;;  %s373_s26 = smov [#allocation9]  }
  0x1e   :  { %50 = vst.msk [vmem:[#allocation2] sm:$0x3] %vm49_vm1, %v371_v60  ;;  %275 = vmatprep.subr.mxu0 %v371_v60  ;;  %277 = vmatprep.mubr.msk.f32.mxu0 %vm372_vm2, %v371_v60  ;;  %v134_v63 = vand.u32 127, %v133_v62  ;;  %vm143_vm3 = vcmask 1041409   ;;  %vm167_vm4 = vcmask 31744   ;;  %vm245_vm5 = vcmask 1041408  }
  0x1f   :  { %v57_v4 = vcombine.high %v53_v2, %v53_v2  ;;  %v62_v5 = vsel %vm61_vm0, %v53_v2, 0.0  ;;  %v58_v6 = vcombine.high %v54_v3, %v54_v3  ;;  %v76_v7 = vsel %vm61_vm0, %v54_v3, 0.0  ;;  %276 = vmatpush3.msk.msra.mxu0 %vm61_vm0, %v159_v61  ;;  %s259_s27 = sshll.u32 %s373_s26, 4  ;;  %s260_s27 = int_to_ptr.vmem [resolvable:$true] %s259_s27 }
  0x20   :  { %v63_v8 = vrot.slane %v62_v5, 4  ;;  %v77_v9 = vrot.slane %v76_v7, 4  ;;  %s341_s28 = scalar_lea.vmem %s260_s27, 32  ;;  %p346_p11 = scmp.lt.s32.totalorder %s260_s27, %s260_s27 }
  0x21   :  { %v69_v10 = vsel %vm61_vm0, %v57_v4, 0.0  ;;  %v83_v11 = vsel %vm61_vm0, %v58_v6, 0.0  ;;  %p342_p10 = scmp.ne.s32.totalorder %s260_s27, %s341_s28  ;;  %p347_p12 = scmp.lt.s32.totalorder %s341_s28, %s341_s28 }
  0x22   :  { %v64_v12 = vadd.f32 %v63_v8, %v62_v5  ;;  %v70_v13 = vrot.slane %v69_v10, 4  ;;  %v78_v14 = vadd.f32 %v77_v9, %v76_v7  ;;  %v84_v15 = vrot.slane %v83_v11, 4 }
  0x23   :  { %p348_p13 = por %p347_p12, %p346_p11 }
  0x24   :  { %v65_v16 = vrot.slane %v64_v12, 2  ;;  %v71_v17 = vadd.f32 %v70_v13, %v69_v10  ;;  %v79_v18 = vrot.slane %v78_v14, 2  ;;  %v85_v19 = vadd.f32 %v84_v15, %v83_v11 }
  0x25   :  { %v114_v6 = vld [vmem:[#allocation2] sm:$0x3]  ;;  %p349_p0 = pnand %p348_p13, %p342_p10 }
  0x26   :  { %v66_v20 = vadd.f32 %v65_v16, %v64_v12  ;;  %v72_v21 = vrot.slane %v71_v17, 2  ;;  %v80_v22 = vadd.f32 %v79_v18, %v78_v14  ;;  %v86_v23 = vrot.slane %v85_v19, 2  ;;  %v270_v16 = vld [vmem:[%s425_s3] ss:$0 sm:$0xff] }
  0x28   :  { %v67_v24 = vrot.slane %v66_v20, 1  ;;  %v73_v25 = vadd.f32 %v72_v21, %v71_v17  ;;  %v81_v26 = vrot.slane %v80_v22, 1  ;;  %v87_v27 = vadd.f32 %v86_v23, %v85_v19 }
  0x2a   :  { %v68_v28 = vadd.f32 %v67_v24, %v66_v20  ;;  %v74_v29 = vrot.slane %v73_v25, 1  ;;  %v82_v30 = vadd.f32 %v81_v26, %v80_v22  ;;  %v88_v31 = vrot.slane %v87_v27, 1 }
  0x2c   :  { %v75_v32 = vadd.f32 %v74_v29, %v73_v25  ;;  %v90_v33 = vmax.f32 %v68_v28, 1e-24  ;;  %v89_v34 = vadd.f32 %v88_v31, %v87_v27  ;;  %v92_v35 = vmax.f32 %v82_v30, 1e-24 }
  0x2e   :  { %v91_v36 = vmax.f32 %v75_v32, 1e-24  ;;  %287 = vrsqrt.f32 %v90_v33  ;;  %v93_v37 = vmax.f32 %v89_v34, 1e-24 }
  0x2f   :  { %289 = vrsqrt.f32 %v92_v35 }
  0x30   :  { %291 = vrsqrt.f32 %v91_v36 }
  0x31   :  { %293 = vrsqrt.f32 %v93_v37 }
  0x3b   :  { %v288_v38 = vpop.eup %287 }
  0x3c   :  { %v290_v39 = vpop.eup %289 }
  0x3d   :  { %v292_v40 = vpop.eup %291 }
  0x3e   :  { %v294_v41 = vpop.eup %293  ;;  %v102_v42 = vcombine.low %v288_v38, %v292_v40 }
  0x3f   :  { %v103_v43 = vcombine.low %v290_v39, %v294_v41 }
  0x40   :  { %v106_v44 = vmul.f32 %v102_v42, %v51_v0  ;;  %v136_v0 = vshrl.u32 %v133_v62, 7 }
  0x41   :  { %v107_v45 = vmul.f32 %v103_v43, %v52_v1 }
  0x42   :  { %v108_v46 = vmax.f32 %v106_v44, 1e-06  ;;  %v137_v2 = vsub.s32 %v134_v63, %v136_v0 }
  0x43   :  { %v109_v47 = vmax.f32 %v107_v45, 1e-06 }
  0x44   :  { %v110_v48 = vmul.f32 %v108_v46, %v108_v46 }
  0x45   :  { %v111_v49 = vmul.f32 %v109_v47, %v109_v47 }
  0x46   :  { %v112_v50 = vmul.f32 %v110_v48, %v108_v46 }
  0x47   :  { %v113_v51 = vmul.f32 %v111_v49, %v109_v47 }
  0x48   :  { %v117_v52 = vcombine.high %v112_v50, %v112_v50  ;;  %v121_v53 = vsel %vm61_vm0, %v112_v50, 0.0 }
  0x49   :  { %v118_v54 = vcombine.high %v113_v51, %v113_v51  ;;  %v126_v56 = vsel %vm61_vm0, %v113_v51, 0.0 }
  0x4a   :  { %v122_v55 = vsel %vm61_vm0, %v117_v52, 0.0 }
  0x4b   :  { %v123_v57 = vadd.f32 %v122_v55, %v121_v53  ;;  %v127_v58 = vsel %vm61_vm0, %v118_v54, 0.0 }
  0x4c   :  { %v128_v59 = vadd.f32 %v127_v58, %v126_v56 }
  0x4d   :  { %124 = vadd.xlane.f32.xlu0 %v123_v57 }
  0x51   :  { %129 = vadd.xlane.f32.xlu0 %v128_v59 }
  0xd6   :  { %v125_v1 = vpop.xlane.xlu0 %124 }
  0xd7   :  { %v138_v4 = vrot.slane %v125_v1, %v137_v2 }
  0xda   :  { %v130_v3 = vpop.xlane.xlu0 %129 }
  0xdb   :  { %v142_v5 = vrot.slane %v130_v3, %v137_v2 }
  0xdd   :  { %v144_v7 = vsel %vm143_vm3, %v142_v5, %v138_v4 }
  0xde   :  { %v146_v8 = vadd.f32 %v144_v7, %v114_v6 }
  0xe0   :  { %148 = vst.msk [vmem:[#allocation2] sm:$0x3] %vm49_vm1, %v146_v8 }
  0xe7   :  { %v152_v9 = vld [vmem:[#allocation2] sm:$0x3] }
  0xe8   :  { %295 = vlog2.f32 %v152_v9 }
  0xf5   :  { %v296_v10 = vpop.eup %295 }
  0xf6   :  { %v154_v11 = vmul.f32 0.6931472, %v296_v10 }
  0xf8   :  { %v269_v12 = vadd.f32 -5.5451775, %v154_v11 }
  0xfa   :  { %v156_v13 = vmul.f32 0.33333334, %v269_v12 }
  0xfc   :  { %v157_v14 = vmul.f32 1.442695, %v156_v13 }
  0xfe   :  { %297 = vpow2.f32 %v157_v14 }
 0x10b   :  { %v298_v15 = vpop.eup %297 }
 0x10c   :  { %278 = vmatmul.mubr.msk.f32.vlgmr.msra.gmra.mxu0 %vm167_vm4, %v298_v15 }
 0x1cc   :  { %v240_v17 = vpop.f32.mrf.mxu0 }
 0x1cd   :  { %v241_v18 = vadd.f32 %v270_v16, %v240_v17 }
 0x1ce   :  { %v279_v19 = vpop.f32.mrf.mxu0 }
 0x1cf   :  { %v244_v20 = vmul.f32 %v241_v18, %v241_v18 }
 0x1d1   :  { %v246_v21 = vsel %vm245_vm5, %v244_v20, 0.0 }
 0x1d2   :  { %247 = vadd.xlane.f32.xlu1 %v246_v21 }
 0x25b   :  { %v248_v22 = vpop.xlane.xlu1 %247 }
 0x25c   :  { %v249_v23 = vmax.f32 %v248_v22, 1e-24 }
 0x25e   :  { %299 = vrsqrt.f32 %v249_v23 }
 0x26b   :  { %v300_v24 = vpop.eup %299 }
 0x26c   :  { %v251_v25 = vmul.f32 %v300_v24, %v241_v18 }
 0x26e   :  { %252 = vst [vmem:[#allocation9] sm:$0x3] %v251_v25 }
 0x26f   :  { %352 = shalt.err (!%p349_p0)
}
 0x270   :  { %262 = dma.vmem_to_hbm [thread:$0]  %s260_s27, 32, %s426_s4, [#allocation6]  }
 0x271   :  { %365 = dma.done.wait [#allocation6], 32  }
 0x272   :  { %366 = vsyncadd [#allocation6], 4294967264 }
 0x273   :  { %266 = vsyncpa [#allocation5], 1 }
 0x274   :  { %267 = vsyncpa [#allocation8], 1 }
 0x275   :  { %268 = vsyncpa [#allocation6], 1 }

</bundles_post_ra>
